<compile_context>
chip_gen: v6e
topology: v6e:2x2x1
jax: 0.10.0
libtpu: 0.0.40
codegen_flags: <defaults>
</compile_context>

<pallas_src>
import numpy as np
import jax
import jax.numpy as jnp
from jax.experimental import pallas as pl
from jax.experimental.pallas import tpu as pltpu


# ---------------- fused Pallas kernel ----------------

def _fused_gcn_kernel(x_ref, a_ref, w_ref, b_ref, o_ref):
    """One row-tile of the fused nconv -> concat -> 1x1-conv block.

    x_ref: [G, C, V]       tile of (n, l) rows, channels, nodes-last (V on lanes)
    a_ref: [K, V, V]       adjacency matrices (same small block every grid step)
    w_ref: [K+1, Cout, C]  1x1-conv weight split per branch (torch.cat order k*C+c)
    b_ref: [Cout, 1]       conv bias (f32)
    o_ref: [G, Cout, V]    output tile, nodes-last
    """
    G, C, V = x_ref.shape
    K = a_ref.shape[0]
    Cout = w_ref.shape[1]
    cdt = x_ref.dtype                       # matmul operand dtype (f32 or bf16)

    x = x_ref[...]                          # [G, C, V]
    x2 = x.reshape(G * C, V)                # nodes on lanes -> clean 2D MXU matmul

    def chan_mix(branch_gcv, wk):
        # sum_c W_k[o, c] * branch[g, c, v] -> [G, Cout, V]  (f32 accumulation)
        wb = jnp.broadcast_to(wk[None].astype(cdt), (G, Cout, C))
        return jnp.einsum('goc,gcv->gov', wb, branch_gcv,
                          preferred_element_type=jnp.float32)

    # branch 0: identity adjacency
    acc = chan_mix(x, w_ref[0])
    # branches 1..K: nconv (x @ A_k), then per-branch channel mix, accumulated in VMEM
    for k in range(K):                      # K is small and static -> unrolled
        t = jnp.dot(x2, a_ref[k], preferred_element_type=jnp.float32)   # [G*C, V]
        acc = acc + chan_mix(t.astype(cdt).reshape(G, C, V), w_ref[k + 1])

    o_ref[...] = (acc + b_ref[...][None].astype(jnp.float32)).astype(o_ref.dtype)


# ---------------- wrapper ----------------

def gcn_forward(x, adjs, weight, bias, *, block_b=64, matmul_dtype=None):
    """
    x:      [N, C, V, L]            (PyTorch NCHW convention of the module)
    adjs:   [K, V, V]               (config.adj_lens adjacency matrices, stacked)
    weight: [Cout, (K+1)*C, 1, 1]   (1x1 Conv2d weight)
    bias:   [Cout]
    block_b: rows (= (n,l) pairs) per tile; sized so (in+out) double buffers plus
             in-kernel temporaries stay well under the 32 MiB scoped-VMEM default,
             including on v7x (64 MiB physical).
    matmul_dtype: optional dtype for the matmul operands (e.g. jnp.bfloat16);
             accumulation is always f32.
    returns [N, Cout, V, L]
    """
    N, C, V, L = x.shape
    K = adjs.shape[0]
    Cout = weight.shape[0]
    assert weight.shape[1] == (K + 1) * C

    cdt = x.dtype if matmul_dtype is None else matmul_dtype

    # nodes-last activation rows (n, l): [B, C, V]   (single input layout pass)
    B = N * L
    x3 = jnp.transpose(x, (0, 3, 1, 2)).reshape(B, C, V).astype(cdt)

    # pad rows so the row-tile divides the grid evenly (remainder handling)
    G = int(min(block_b, B))
    B_pad = ((B + G - 1) // G) * G
    if B_pad != B:
        x3 = jnp.pad(x3, ((0, B_pad - B), (0, 0), (0, 0)))

    # split 1x1-conv weight into per-branch blocks; torch.cat order is k*C + c
    w_split = jnp.transpose(weight.reshape(Cout, K + 1, C), (1, 0, 2)).astype(cdt)
    a_stack = adjs.astype(cdt)
    b_col = bias.reshape(Cout, 1).astype(jnp.float32)

    out3 = pl.pallas_call(
        _fused_gcn_kernel,
        out_shape=jax.ShapeDtypeStruct((B_pad, Cout, V), x.dtype),
        grid=(B_pad // G,),
        in_specs=[
            pl.BlockSpec((G, C, V), lambda i: (i, 0, 0)),
            pl.BlockSpec((K, V, V), lambda i: (0, 0, 0)),
            pl.BlockSpec((K + 1, Cout, C), lambda i: (0, 0, 0)),
            pl.BlockSpec((Cout, 1), lambda i: (0, 0)),
        ],
        out_specs=pl.BlockSpec((G, Cout, V), lambda i: (i, 0, 0)),
        compiler_params=pltpu.CompilerParams(
            dimension_semantics=("parallel",),   # row tiles are independent (2 TCs on v7x)
        ),
    )(x3, a_stack, w_split, b_col)

    out = out3[:B].reshape(N, L, Cout, V)
    out = jnp.transpose(out, (0, 2, 3, 1))       # present PyTorch layout [N, Cout, V, L]

    # TODO(synk): F.dropout(p=config.gcn_dropout) is identity in eval mode;
    # stochastic training-mode dropout is not implemented here.
    return out


# ---------------- demo / self-check ----------------

if __name__ == "__main__":
    # config: residual_channels = 8, adj_lens = 2
    N, C, V, L, K = 2, 8, 16, 8, 2
    Cin, Cout = (K + 1) * C, C

    key = jax.random.PRNGKey(0)
    k1, k2, k3, k4 = jax.random.split(key, 4)
    x = jax.random.normal(k1, (N, C, V, L), dtype=jnp.float32)
    adjs = jax.nn.softmax(jax.random.normal(k2, (K, V, V), dtype=jnp.float32), axis=-1)
    weight = jax.random.normal(k3, (Cout, Cin, 1, 1), dtype=jnp.float32) / np.sqrt(Cin)
    bias = jax.random.normal(k4, (Cout,), dtype=jnp.float32) * 0.01

    out = jax.block_until_ready(gcn_forward(x, adjs, weight, bias))

    # pure-JAX reference (mirrors the PyTorch forward semantics)
    branches = [x] + [jnp.einsum('ncvl,vw->ncwl', x, adjs[k]) for k in range(K)]
    h_ref = jnp.concatenate(branches, axis=1)                          # [N, (K+1)C, V, L]
    ref = jnp.einsum('oc,ncvl->novl', weight.reshape(Cout, Cin), h_ref)
    ref = ref + bias[None, :, None, None]

    assert out.shape == (N, Cout, V, L)
    np.testing.assert_allclose(np.asarray(out), np.asarray(ref), rtol=1e-4, atol=1e-4)

    # bf16 matmul operands (native MXU dtype on v6e/v7x), f32 accumulation.
    out_bf16 = jax.block_until_ready(
        gcn_forward(x, adjs, weight, bias, matmul_dtype=jnp.bfloat16))
    np.testing.assert_allclose(np.asarray(out_bf16), np.asarray(ref), rtol=5e-2, atol=5e-2)

    print("KERNEL_OK")
</pallas_src>

<mosaic_0001>
module attributes {stable_mosaic.version = 11 : i64} {
  func.func @_fused_gcn_kernel(%arg0: i32, %arg1: memref<16x8x16xf32, #tpu.memory_space<vmem>>, %arg2: memref<2x16x16xf32, #tpu.memory_space<vmem>>, %arg3: memref<3x8x8xf32, #tpu.memory_space<vmem>>, %arg4: memref<8x1xf32, #tpu.memory_space<vmem>>, %arg5: memref<16x8x16xf32, #tpu.memory_space<vmem>>) attributes {dimension_semantics = [#tpu.dimension_semantics<parallel>], iteration_bounds = array<i64: 1>, scalar_prefetch = 0 : i64, scratch_operands = 0 : i64, tpu.core_type = #tpu.core_type<tc>, window_params = [{transform_indices = @transform_0, window_bounds = array<i64: 16, 8, 16>}, {pipeline_mode = #tpu.pipeline_mode<synchronous>, transform_indices = @transform_1, window_bounds = array<i64: 2, 16, 16>}, {pipeline_mode = #tpu.pipeline_mode<synchronous>, transform_indices = @transform_2, window_bounds = array<i64: 3, 8, 8>}, {pipeline_mode = #tpu.pipeline_mode<synchronous>, transform_indices = @transform_3, window_bounds = array<i64: 8, 1>}, {transform_indices = @transform_4, window_bounds = array<i64: 16, 8, 16>}]} {
    %c0 = arith.constant 0 : index
    %c0_0 = arith.constant 0 : index
    %c0_1 = arith.constant 0 : index
    %0 = vector.load %arg1[%c0, %c0_0, %c0_1] : memref<16x8x16xf32, #tpu.memory_space<vmem>>, vector<16x8x16xf32>
    %1 = vector.shape_cast %0 : vector<16x8x16xf32> to vector<128x16xf32>
    %c0_2 = arith.constant 0 : index
    %c0_3 = arith.constant 0 : index
    %c0_4 = arith.constant 0 : index
    %2 = vector.load %arg3[%c0_2, %c0_3, %c0_4] : memref<3x8x8xf32, #tpu.memory_space<vmem>>, vector<1x8x8xf32>
    %3 = vector.shape_cast %2 : vector<1x8x8xf32> to vector<8x8xf32>
    %4 = vector.shape_cast %3 : vector<8x8xf32> to vector<1x8x8xf32>
    %5 = vector.shape_cast %4 : vector<1x8x8xf32> to vector<1x8x8xf32>
    %6 = vector.broadcast %5 : vector<1x8x8xf32> to vector<16x8x8xf32>
    "tpu.trace_start"() <{level = 10 : i32, message = "goc,gcv->gov"}> : () -> ()
    %cst = arith.constant dense<0.000000e+00> : vector<16x8x16xf32>
    %7 = tpu.matmul %6, %0, %cst {dimension_numbers = #tpu.dot_dimension_numbers<[2], [1], [1], [2], [0, 0, 0, 1, 1, 2], [0], [0]>} : vector<16x8x8xf32>, vector<16x8x16xf32>, vector<16x8x16xf32> -> vector<16x8x16xf32>
    "tpu.trace_stop"() : () -> ()
    %c0_5 = arith.constant 0 : index
    %c0_6 = arith.constant 0 : index
    %c0_7 = arith.constant 0 : index
    %8 = vector.load %arg2[%c0_5, %c0_6, %c0_7] : memref<2x16x16xf32, #tpu.memory_space<vmem>>, vector<1x16x16xf32>
    %9 = vector.shape_cast %8 : vector<1x16x16xf32> to vector<16x16xf32>
    %cst_8 = arith.constant dense<0.000000e+00> : vector<128x16xf32>
    %10 = tpu.matmul %1, %9, %cst_8 {dimension_numbers = #tpu.dot_dimension_numbers<[1], [0], [0], [1], [0, 0, 1, 1], [], []>} : vector<128x16xf32>, vector<16x16xf32>, vector<128x16xf32> -> vector<128x16xf32>
    %11 = vector.shape_cast %10 : vector<128x16xf32> to vector<16x8x16xf32>
    %c1 = arith.constant 1 : index
    %c0_9 = arith.constant 0 : index
    %c0_10 = arith.constant 0 : index
    %12 = vector.load %arg3[%c1, %c0_9, %c0_10] : memref<3x8x8xf32, #tpu.memory_space<vmem>>, vector<1x8x8xf32>
    %13 = vector.shape_cast %12 : vector<1x8x8xf32> to vector<8x8xf32>
    %14 = vector.shape_cast %13 : vector<8x8xf32> to vector<1x8x8xf32>
    %15 = vector.shape_cast %14 : vector<1x8x8xf32> to vector<1x8x8xf32>
    %16 = vector.broadcast %15 : vector<1x8x8xf32> to vector<16x8x8xf32>
    "tpu.trace_start"() <{level = 10 : i32, message = "goc,gcv->gov"}> : () -> ()
    %cst_11 = arith.constant dense<0.000000e+00> : vector<16x8x16xf32>
    %17 = tpu.matmul %16, %11, %cst_11 {dimension_numbers = #tpu.dot_dimension_numbers<[2], [1], [1], [2], [0, 0, 0, 1, 1, 2], [0], [0]>} : vector<16x8x8xf32>, vector<16x8x16xf32>, vector<16x8x16xf32> -> vector<16x8x16xf32>
    "tpu.trace_stop"() : () -> ()
    %18 = arith.addf %7, %17 : vector<16x8x16xf32>
    %c1_12 = arith.constant 1 : index
    %c0_13 = arith.constant 0 : index
    %c0_14 = arith.constant 0 : index
    %19 = vector.load %arg2[%c1_12, %c0_13, %c0_14] : memref<2x16x16xf32, #tpu.memory_space<vmem>>, vector<1x16x16xf32>
    %20 = vector.shape_cast %19 : vector<1x16x16xf32> to vector<16x16xf32>
    %cst_15 = arith.constant dense<0.000000e+00> : vector<128x16xf32>
    %21 = tpu.matmul %1, %20, %cst_15 {dimension_numbers = #tpu.dot_dimension_numbers<[1], [0], [0], [1], [0, 0, 1, 1], [], []>} : vector<128x16xf32>, vector<16x16xf32>, vector<128x16xf32> -> vector<128x16xf32>
    %22 = vector.shape_cast %21 : vector<128x16xf32> to vector<16x8x16xf32>
    %c2 = arith.constant 2 : index
    %c0_16 = arith.constant 0 : index
    %c0_17 = arith.constant 0 : index
    %23 = vector.load %arg3[%c2, %c0_16, %c0_17] : memref<3x8x8xf32, #tpu.memory_space<vmem>>, vector<1x8x8xf32>
    %24 = vector.shape_cast %23 : vector<1x8x8xf32> to vector<8x8xf32>
    %25 = vector.shape_cast %24 : vector<8x8xf32> to vector<1x8x8xf32>
    %26 = vector.shape_cast %25 : vector<1x8x8xf32> to vector<1x8x8xf32>
    %27 = vector.broadcast %26 : vector<1x8x8xf32> to vector<16x8x8xf32>
    "tpu.trace_start"() <{level = 10 : i32, message = "goc,gcv->gov"}> : () -> ()
    %cst_18 = arith.constant dense<0.000000e+00> : vector<16x8x16xf32>
    %28 = tpu.matmul %27, %22, %cst_18 {dimension_numbers = #tpu.dot_dimension_numbers<[2], [1], [1], [2], [0, 0, 0, 1, 1, 2], [0], [0]>} : vector<16x8x8xf32>, vector<16x8x16xf32>, vector<16x8x16xf32> -> vector<16x8x16xf32>
    "tpu.trace_stop"() : () -> ()
    %29 = arith.addf %18, %28 : vector<16x8x16xf32>
    %c0_19 = arith.constant 0 : index
    %c0_20 = arith.constant 0 : index
    %30 = vector.load %arg4[%c0_19, %c0_20] : memref<8x1xf32, #tpu.memory_space<vmem>>, vector<8x1xf32>
    %31 = vector.shape_cast %30 : vector<8x1xf32> to vector<1x8x1xf32>
    %32 = vector.broadcast %31 : vector<1x8x1xf32> to vector<16x8x16xf32>
    %33 = arith.addf %29, %32 : vector<16x8x16xf32>
    %c0_21 = arith.constant 0 : index
    %c0_22 = arith.constant 0 : index
    %c0_23 = arith.constant 0 : index
    %34 = vector.load %arg5[%c0_21, %c0_22, %c0_23] : memref<16x8x16xf32, #tpu.memory_space<vmem>>, vector<16x8x16xf32>
    tpu.vector_store %arg5[%c0_21, %c0_22, %c0_23], %33 {strides = array<i32>} : memref<16x8x16xf32, #tpu.memory_space<vmem>>, vector<16x8x16xf32>,
    return
  }
  func.func @transform_0(%arg0: i32) -> (i32, i32, i32) {
    %c0_i32 = arith.constant 0 : i32
    %c0_i32_0 = arith.constant 0 : i32
    %c0_i32_1 = arith.constant 0 : i32
    return %arg0, %c0_i32, %c0_i32_0 : i32, i32, i32
  }
  func.func @transform_1(%arg0: i32) -> (i32, i32, i32) {
    %c0_i32 = arith.constant 0 : i32
    %c0_i32_0 = arith.constant 0 : i32
    %c0_i32_1 = arith.constant 0 : i32
    %c0_i32_2 = arith.constant 0 : i32
    return %c0_i32, %c0_i32_0, %c0_i32_1 : i32, i32, i32
  }
  func.func @transform_2(%arg0: i32) -> (i32, i32, i32) {
    %c0_i32 = arith.constant 0 : i32
    %c0_i32_0 = arith.constant 0 : i32
    %c0_i32_1 = arith.constant 0 : i32
    %c0_i32_2 = arith.constant 0 : i32
    return %c0_i32, %c0_i32_0, %c0_i32_1 : i32, i32, i32
  }
  func.func @transform_3(%arg0: i32) -> (i32, i32) {
    %c0_i32 = arith.constant 0 : i32
    %c0_i32_0 = arith.constant 0 : i32
    %c0_i32_1 = arith.constant 0 : i32
    return %c0_i32, %c0_i32_0 : i32, i32
  }
  func.func @transform_4(%arg0: i32) -> (i32, i32, i32) {
    %c0_i32 = arith.constant 0 : i32
    %c0_i32_0 = arith.constant 0 : i32
    %c0_i32_1 = arith.constant 0 : i32
    return %arg0, %c0_i32, %c0_i32_0 : i32, i32, i32
  }
}

</mosaic_0001>

<bundles_post_ra>
// kernel: tpu_custom_call.1
= control target key start
LH: loop header
LB: loop body
LE: loop exit
PB: predicated region body
PF: predicated region fallthrough
CT: control target
= control target key end

     0   :  { %9 = vsyncpa [#allocation3], 0  ;;  %s4971_s0 = inlined_call_operand.hbm [shape: f32[16,8,16], index: 0, kind: input, shape index: {}]   ;;  %s4972_s1 = inlined_call_operand.hbm [shape: f32[2,16,16], index: 1, kind: input, shape index: {}]   ;;  %s4973_s2 = inlined_call_operand.hbm [shape: f32[3,8,8], index: 2, kind: input, shape index: {}]   ;;  %s4974_s3 = inlined_call_operand.vmem [shape: f32[8,1], index: 3, kind: input, shape index: {}]   ;;  %s4975_s4 = inlined_call_operand.hbm [shape: f32[16,8,16], index: 4, kind: output, shape index: {}]  }
   0x1   :  { %10 = vsyncpa [#allocation6], 0 }
   0x2   :  { %11 = vsyncpa [#allocation4], 0  ;;  %s4470_s15 = smov [#allocation5]   ;;  %s4471_s17 = smov [#allocation2]  }
   0x3   :  { %s29_s16 = sshll.u32 %s4470_s15, 4  ;;  %s17_s18 = sshll.u32 %s4471_s17, 4  ;;  %s30_s16 = int_to_ptr.vmem [resolvable:$true] %s29_s16  ;;  %s18_s18 = int_to_ptr.vmem [resolvable:$true] %s17_s18 }
   0x4   :  { %s4392_s19 = scalar_lea.vmem %s30_s16, 512  ;;  %p4397_p1 = scmp.lt.s32.totalorder %s30_s16, %s30_s16 }
   0x5   :  { %p4393_p0 = scmp.ne.s32.totalorder %s30_s16, %s4392_s19  ;;  %p4398_p2 = scmp.lt.s32.totalorder %s4392_s19, %s4392_s19 }
   0x7   :  { %p4399_p3 = por %p4398_p2, %p4397_p1 }
   0x9   :  { %p4400_p4 = pnand %p4399_p3, %p4393_p0 }
   0xb   :  { %4403 = shalt.err (!%p4400_p4)
}
   0xc   :  { %s4472_s20 = smov 128   ;;  %s4473_s21 = smov 8  }
   0xd   :  { %35 = dma.hbm_to_vmem [thread:$0]  %s4972_s1, 512, %s30_s16, [#allocation6], %s4472_s20, %s4472_s20, %s4473_s21  }
   0xe   :  { %s4412_s24 = scalar_lea.vmem %s18_s18, 2048  ;;  %p4417_p6 = scmp.lt.s32.totalorder %s18_s18, %s18_s18 }
   0xf   :  { %p4413_p5 = scmp.ne.s32.totalorder %s18_s18, %s4412_s24  ;;  %p4418_p7 = scmp.lt.s32.totalorder %s4412_s24, %s4412_s24 }
  0x11   :  { %p4419_p8 = por %p4418_p7, %p4417_p6 }
  0x13   :  { %p4420_p9 = pnand %p4419_p8, %p4413_p5 }
  0x15   :  { %4423 = shalt.err (!%p4420_p9)
}
  0x16   :  { %23 = dma.hbm_to_vmem [thread:$0]  %s4971_s0, 2048, %s18_s18, [#allocation3], %s4472_s20, %s4472_s20, %s4473_s21  }
  0x17   :  { %s4474_s27 = smov [#allocation7]  }
  0x18   :  { %s41_s28 = sshll.u32 %s4474_s27, 4  ;;  %s42_s28 = int_to_ptr.vmem [resolvable:$true] %s41_s28 }
  0x19   :  { %s4432_s29 = scalar_lea.vmem %s42_s28, 384  ;;  %p4437_p11 = scmp.lt.s32.totalorder %s42_s28, %s42_s28 }
  0x1a   :  { %p4433_p10 = scmp.ne.s32.totalorder %s42_s28, %s4432_s29  ;;  %p4438_p12 = scmp.lt.s32.totalorder %s4432_s29, %s4432_s29 }
  0x1c   :  { %p4439_p13 = por %p4438_p12, %p4437_p11 }
  0x1e   :  { %p4440_p0 = pnand %p4439_p13, %p4433_p10 }
  0x20   :  { %4443 = shalt.err (!%p4440_p0)
}
  0x21   :  { %47 = dma.hbm_to_vmem [thread:$0]  %s4973_s2, 384, %s42_s28, [#allocation6], %s4472_s20, %s4472_s20, %s4473_s21  }
  0x22   :  { %4464 = dma.done.wait [#allocation3], 2048  }
  0x23   :  { %4465 = vsyncadd [#allocation3], 4294965248 }
  0x24   :  { %4466 = dma.done.wait [#allocation6], 896  }
  0x25   :  { %4467 = vsyncadd [#allocation6], 4294966400  ;;  %vm78_vm0 = vcmask 130048   ;;  %v77_v0 = vld [vmem:[#allocation5 + $0x8] sm:$0xff]  ;;  %v76_v1 = vld [vmem:[#allocation5] sm:$0xff]  ;;  %v4475_v18 = vmov 0.0  }
  0x26   :  { %v4522_v2 = vld [vmem:[#allocation2] sm:$0xff]  ;;  %4078 = vmatprep.subr.mxu0 %v77_v0  ;;  %v4526_v3 = vld [vmem:[#allocation2 + $0x8] sm:$0xff]  ;;  %v4528_v4 = vld [vmem:[#allocation2 + $0x10] sm:$0xff]  ;;  %4106 = vmatprep.subr.mxu1 %v4475_v18  ;;  %vm4476_vm1 = vmmov 0   ;;  %vm274_vm2 = vcmask 64512   ;;  %v4477_v41 = vmov 0  }
  0x27   :  { %4082 = vmatprep.mubr.msk.f32.mxu0 %vm78_vm0, %v4522_v2  ;;  %4079 = vmatpush3.msra.mxu0 %v77_v0  ;;  %v4534_v5 = vld [vmem:[#allocation2 + $0x18] sm:$0xff]  ;;  %v4536_v6 = vld [vmem:[#allocation2 + $0x20] sm:$0xff]  ;;  %v4542_v7 = vld [vmem:[#allocation2 + $0x28] sm:$0xff] }
  0x28   :  { %4080 = vmatprep.subr.mxu0 %v76_v1  ;;  %v4544_v8 = vld [vmem:[#allocation2 + $0x30] sm:$0xff]  ;;  %v4550_v9 = vld [vmem:[#allocation2 + $0x38] sm:$0xff]  ;;  %v4552_v10 = vld [vmem:[#allocation2 + $0x40] sm:$0xff]  ;;  %4108 = vmatprep.mubr.msk.f32.mxu1 %vm4476_vm1, %v4475_v18 }
  0x29   :  { %4081 = vmatpush3.msra.mxu0 %v76_v1  ;;  %v4558_v11 = vld [vmem:[#allocation2 + $0x48] sm:$0xff]  ;;  %v4560_v12 = vld [vmem:[#allocation2 + $0x50] sm:$0xff]  ;;  %v4566_v13 = vld [vmem:[#allocation2 + $0x58] sm:$0xff]  ;;  %4383 = vset.pattern.permute.xlu0 %v4477_v41 }
  0x2a   :  { %4083 = vmatmul.mubr.msk.f32.vlgmr.msra.gmra.mxu0 %vm78_vm0, %v4526_v3  ;;  %v4568_v14 = vld [vmem:[#allocation2 + $0x60] sm:$0xff]  ;;  %v4574_v15 = vld [vmem:[#allocation2 + $0x68] sm:$0xff]  ;;  %v4576_v16 = vld [vmem:[#allocation2 + $0x70] sm:$0xff]  ;;  %4151 = vmatprep.subr.mxu0 %v4475_v18 }
  0x2b   :  { %4085 = vmatprep.mubr.msk.f32.mxu0 %vm78_vm0, %v4528_v4  ;;  %v4582_v17 = vld [vmem:[#allocation2 + $0x78] sm:$0xff]  ;;  %v4592_v20 = vld [vmem:[#allocation7 + $0x8] sm:$0xff]  ;;  %v4648_v35 = vld [vmem:[#allocation7] sm:$0xff] }
  0x2c   :  { %v2523_v37 = vld [vmem:[#allocation5 + $0x18] sm:$0xff]  ;;  %v2522_v38 = vld [vmem:[#allocation5 + $0x10] sm:$0xff]  ;;  %v3810_v40 = vld [vmem:[%s4974_s3] sm:$0xff]  ;;  %s4478_s3 = smov [#allocation8]  }
  0x2d   :  { %3813 = vperm.xlu0 %4383, %v3810_v40   ;;  %s3853_s5 = sshll.u32 %s4478_s3, 4  ;;  %s3854_s5 = int_to_ptr.vmem [resolvable:$true] %s3853_s5 }
  0x2e   :  { %4086 = vmatmul.mubr.msk.f32.gmra.mxu0 %vm78_vm0, %v4534_v5  ;;  %s4444_s6 = scalar_lea.vmem %s3854_s5, 2048  ;;  %p4449_p2 = scmp.lt.s32.totalorder %s3854_s5, %s3854_s5 }
  0x2f   :  { %4088 = vmatprep.mubr.msk.f32.mxu0 %vm78_vm0, %v4536_v6  ;;  %p4445_p1 = scmp.ne.s32.totalorder %s3854_s5, %s4444_s6  ;;  %p4450_p3 = scmp.lt.s32.totalorder %s4444_s6, %s4444_s6 }
  0x31   :  { %p4451_p4 = por %p4450_p3, %p4449_p2 }
  0x32   :  { %4089 = vmatmul.mubr.msk.f32.gmra.mxu0 %vm78_vm0, %v4542_v7 }
  0x33   :  { %4091 = vmatprep.mubr.msk.f32.mxu0 %vm78_vm0, %v4544_v8  ;;  %p4452_p5 = pnand %p4451_p4, %p4445_p1 }
  0x36   :  { %4092 = vmatmul.mubr.msk.f32.gmra.mxu0 %vm78_vm0, %v4550_v9 }
  0x37   :  { %4094 = vmatprep.mubr.msk.f32.mxu0 %vm78_vm0, %v4552_v10 }
  0x3a   :  { %4095 = vmatmul.mubr.msk.f32.gmra.mxu0 %vm78_vm0, %v4558_v11 }
  0x3b   :  { %4097 = vmatprep.mubr.msk.f32.mxu0 %vm78_vm0, %v4560_v12 }
  0x3e   :  { %4098 = vmatmul.mubr.msk.f32.gmra.mxu0 %vm78_vm0, %v4566_v13 }
  0x3f   :  { %4100 = vmatprep.mubr.msk.f32.mxu0 %vm78_vm0, %v4568_v14 }
  0x42   :  { %4101 = vmatmul.mubr.msk.f32.gmra.mxu0 %vm78_vm0, %v4574_v15 }
  0x43   :  { %4103 = vmatprep.mubr.msk.f32.mxu0 %vm78_vm0, %v4576_v16 }
  0x46   :  { %4104 = vmatmul.mubr.msk.f32.gmra.mxu0 %vm78_vm0, %v4582_v17 }
  0x47   :  { %4153 = vmatprep.mubr.msk.f32.mxu0 %vm4476_vm1, %v4475_v18 }
  0xea   :  { %v4084_v19 = vpop.f32.mrf.mxu0 }
  0xec   :  { %v193_v21 = vpop.f32.mrf.mxu0 }
  0xed   :  { %4107 = vmatpush3.msra.mxu1 %v193_v21 }
  0xee   :  { %v4087_v22 = vpop.f32.mrf.mxu0  ;;  %4109 = vmatmul.mubr.msk.f32.vlgmr.msra.gmra.mxu1 %vm274_vm2, %v4592_v20  ;;  %4111 = vmatprep.subr.mxu1 %v4475_v18 }
  0xef   :  { %4112 = vmatpush3.msra.mxu1 %v4084_v19  ;;  %4113 = vmatprep.mubr.msk.f32.mxu1 %vm4476_vm1, %v4475_v18 }
  0xf0   :  { %v203_v23 = vpop.f32.mrf.mxu0  ;;  %4116 = vmatprep.subr.mxu1 %v4475_v18 }
  0xf2   :  { %v4090_v24 = vpop.f32.mrf.mxu0  ;;  %4114 = vmatmul.mubr.msk.f32.vlgmr.msra.gmra.mxu1 %vm274_vm2, %v4592_v20 }
  0xf3   :  { %4117 = vmatpush3.msra.mxu1 %v203_v23  ;;  %4118 = vmatprep.mubr.msk.f32.mxu1 %vm4476_vm1, %v4475_v18 }
  0xf4   :  { %v213_v25 = vpop.f32.mrf.mxu0  ;;  %4121 = vmatprep.subr.mxu1 %v4475_v18 }
  0xf6   :  { %v4093_v26 = vpop.f32.mrf.mxu0  ;;  %4119 = vmatmul.mubr.msk.f32.vlgmr.msra.gmra.mxu1 %vm274_vm2, %v4592_v20 }
  0xf7   :  { %4122 = vmatpush3.msra.mxu1 %v4087_v22  ;;  %4123 = vmatprep.mubr.msk.f32.mxu1 %vm4476_vm1, %v4475_v18 }
  0xf8   :  { %v223_v27 = vpop.f32.mrf.mxu0  ;;  %4126 = vmatprep.subr.mxu1 %v4475_v18 }
  0xfa   :  { %v4096_v28 = vpop.f32.mrf.mxu0  ;;  %4124 = vmatmul.mubr.msk.f32.vlgmr.msra.gmra.mxu1 %vm274_vm2, %v4592_v20 }
  0xfb   :  { %4127 = vmatpush3.msra.mxu1 %v213_v25  ;;  %4152 = vmatpush3.msra.mxu0 %v4096_v28 }
  0xfc   :  { %v233_v29 = vpop.f32.mrf.mxu0  ;;  %4154 = vmatmul.mubr.msk.f32.vlgmr.msra.gmra.mxu0 %vm274_vm2, %v4592_v20  ;;  %4128 = vmatprep.mubr.msk.f32.mxu1 %vm4476_vm1, %v4475_v18 }
  0xfd   :  { %4131 = vmatprep.subr.mxu1 %v4475_v18  ;;  %4161 = vmatprep.subr.mxu0 %v4475_v18 }
  0xfe   :  { %v4099_v30 = vpop.f32.mrf.mxu0  ;;  %4129 = vmatmul.mubr.msk.f32.vlgmr.msra.gmra.mxu1 %vm274_vm2, %v4592_v20  ;;  %4163 = vmatprep.mubr.msk.f32.mxu0 %vm4476_vm1, %v4475_v18 }
  0xff   :  { %4132 = vmatpush3.msra.mxu1 %v4090_v24  ;;  %4162 = vmatpush3.msra.mxu0 %v4099_v30 }
 0x100   :  { %v243_v31 = vpop.f32.mrf.mxu0  ;;  %4164 = vmatmul.mubr.msk.f32.vlgmr.msra.gmra.mxu0 %vm274_vm2, %v4592_v20  ;;  %4133 = vmatprep.mubr.msk.f32.mxu1 %vm4476_vm1, %v4475_v18 }
 0x101   :  { %4136 = vmatprep.subr.mxu1 %v4475_v18  ;;  %4171 = vmatprep.subr.mxu0 %v4475_v18 }
 0x102   :  { %v4102_v32 = vpop.f32.mrf.mxu0  ;;  %4134 = vmatmul.mubr.msk.f32.vlgmr.msra.gmra.mxu1 %vm274_vm2, %v4592_v20  ;;  %4173 = vmatprep.mubr.msk.f32.mxu0 %vm4476_vm1, %v4475_v18 }
 0x103   :  { %4137 = vmatpush3.msra.mxu1 %v223_v27  ;;  %4172 = vmatpush3.msra.mxu0 %v4102_v32 }
 0x104   :  { %v253_v33 = vpop.f32.mrf.mxu0  ;;  %4174 = vmatmul.mubr.msk.f32.vlgmr.msra.gmra.mxu0 %vm274_vm2, %v4592_v20  ;;  %4138 = vmatprep.mubr.msk.f32.mxu1 %vm4476_vm1, %v4475_v18 }
 0x105   :  { %4141 = vmatprep.subr.mxu1 %v4475_v18  ;;  %4181 = vmatprep.subr.mxu0 %v4475_v18 }
 0x106   :  { %v4105_v34 = vpop.f32.mrf.mxu0  ;;  %4139 = vmatmul.mubr.msk.f32.vlgmr.msra.gmra.mxu1 %vm274_vm2, %v4592_v20  ;;  %4183 = vmatprep.mubr.msk.f32.mxu0 %vm4476_vm1, %v4475_v18 }
 0x107   :  { %4142 = vmatpush3.msra.mxu1 %v4093_v26  ;;  %4182 = vmatpush3.msra.mxu0 %v4105_v34 }
 0x108   :  { %4184 = vmatmul.mubr.msk.f32.vlgmr.msra.gmra.mxu0 %vm274_vm2, %v4592_v20  ;;  %4143 = vmatprep.mubr.msk.f32.mxu1 %vm4476_vm1, %v4475_v18  ;;  %v263_v36 = vpop.f32.mrf.mxu0 }
 0x109   :  { %4146 = vmatprep.subr.mxu1 %v4475_v18  ;;  %4191 = vmatprep.subr.mxu0 %v4475_v18 }
 0x10a   :  { %4144 = vmatmul.mubr.msk.f32.vlgmr.msra.gmra.mxu1 %vm274_vm2, %v4592_v20  ;;  %4192 = vmatpush3.msra.mxu0 %v4526_v3 }
 0x10b   :  { %4147 = vmatpush3.msra.mxu1 %v233_v29  ;;  %4193 = vmatprep.mubr.msk.f32.mxu0 %vm4476_vm1, %v4475_v18 }
 0x10c   :  { %4194 = vmatmul.mubr.msk.f32.vlgmr.msra.gmra.mxu0 %vm274_vm2, %v4648_v35  ;;  %4148 = vmatprep.mubr.msk.f32.mxu1 %vm4476_vm1, %v4475_v18 }
 0x10d   :  { %4156 = vmatprep.subr.mxu1 %v4475_v18  ;;  %4201 = vmatprep.subr.mxu0 %v4475_v18 }
 0x10e   :  { %4149 = vmatmul.mubr.msk.f32.vlgmr.msra.gmra.mxu1 %vm274_vm2, %v4592_v20  ;;  %4202 = vmatpush3.msra.mxu0 %v4534_v5 }
 0x10f   :  { %4157 = vmatpush3.msra.mxu1 %v243_v31  ;;  %4203 = vmatprep.mubr.msk.f32.mxu0 %vm4476_vm1, %v4475_v18 }
 0x110   :  { %4204 = vmatmul.mubr.msk.f32.vlgmr.msra.gmra.mxu0 %vm274_vm2, %v4648_v35  ;;  %4158 = vmatprep.mubr.msk.f32.mxu1 %vm4476_vm1, %v4475_v18 }
 0x111   :  { %4166 = vmatprep.subr.mxu1 %v4475_v18  ;;  %4211 = vmatprep.subr.mxu0 %v4475_v18 }
 0x112   :  { %4159 = vmatmul.mubr.msk.f32.vlgmr.msra.gmra.mxu1 %vm274_vm2, %v4592_v20  ;;  %4212 = vmatpush3.msra.mxu0 %v4542_v7 }
 0x113   :  { %4167 = vmatpush3.msra.mxu1 %v253_v33  ;;  %4213 = vmatprep.mubr.msk.f32.mxu0 %vm4476_vm1, %v4475_v18 }
 0x114   :  { %4214 = vmatmul.mubr.msk.f32.vlgmr.msra.gmra.mxu0 %vm274_vm2, %v4648_v35  ;;  %4168 = vmatprep.mubr.msk.f32.mxu1 %vm4476_vm1, %v4475_v18 }
 0x115   :  { %4176 = vmatprep.subr.mxu1 %v4475_v18  ;;  %4221 = vmatprep.subr.mxu0 %v4475_v18 }
 0x116   :  { %4169 = vmatmul.mubr.msk.f32.vlgmr.msra.gmra.mxu1 %vm274_vm2, %v4592_v20  ;;  %4222 = vmatpush3.msra.mxu0 %v4550_v9 }
 0x117   :  { %4177 = vmatpush3.msra.mxu1 %v263_v36  ;;  %4223 = vmatprep.mubr.msk.f32.mxu0 %vm4476_vm1, %v4475_v18 }
 0x118   :  { %4224 = vmatmul.mubr.msk.f32.vlgmr.msra.gmra.mxu0 %vm274_vm2, %v4648_v35  ;;  %4178 = vmatprep.mubr.msk.f32.mxu1 %vm4476_vm1, %v4475_v18 }
 0x119   :  { %4186 = vmatprep.subr.mxu1 %v4475_v18  ;;  %4231 = vmatprep.subr.mxu0 %v4475_v18 }
 0x11a   :  { %4179 = vmatmul.mubr.msk.f32.vlgmr.msra.gmra.mxu1 %vm274_vm2, %v4592_v20  ;;  %4232 = vmatpush3.msra.mxu0 %v4558_v11 }
 0x11b   :  { %4187 = vmatpush3.msra.mxu1 %v4522_v2  ;;  %4188 = vmatprep.mubr.msk.f32.mxu1 %vm4476_vm1, %v4475_v18 }
 0x11c   :  { %4196 = vmatprep.subr.mxu1 %v4475_v18  ;;  %4233 = vmatprep.mubr.msk.f32.mxu0 %vm4476_vm1, %v4475_v18 }
 0x11d   :  { %4234 = vmatmul.mubr.msk.f32.vlgmr.msra.gmra.mxu0 %vm274_vm2, %v4648_v35  ;;  %4241 = vmatprep.subr.mxu0 %v4475_v18 }
 0x11e   :  { %4189 = vmatmul.mubr.msk.f32.vlgmr.msra.gmra.mxu1 %vm274_vm2, %v4648_v35  ;;  %4242 = vmatpush3.msra.mxu0 %v4566_v13 }
 0x11f   :  { %4197 = vmatpush3.msra.mxu1 %v4528_v4  ;;  %4198 = vmatprep.mubr.msk.f32.mxu1 %vm4476_vm1, %v4475_v18 }
 0x120   :  { %4206 = vmatprep.subr.mxu1 %v4475_v18  ;;  %4243 = vmatprep.mubr.msk.f32.mxu0 %vm4476_vm1, %v4475_v18 }
 0x121   :  { %4244 = vmatmul.mubr.msk.f32.vlgmr.msra.gmra.mxu0 %vm274_vm2, %v4648_v35  ;;  %4251 = vmatprep.subr.mxu0 %v4475_v18 }
 0x122   :  { %4199 = vmatmul.mubr.msk.f32.vlgmr.msra.gmra.mxu1 %vm274_vm2, %v4648_v35  ;;  %4252 = vmatpush3.msra.mxu0 %v4574_v15 }
 0x123   :  { %4207 = vmatpush3.msra.mxu1 %v4536_v6  ;;  %4208 = vmatprep.mubr.msk.f32.mxu1 %vm4476_vm1, %v4475_v18 }
 0x124   :  { %4216 = vmatprep.subr.mxu1 %v4475_v18  ;;  %4253 = vmatprep.mubr.msk.f32.mxu0 %vm4476_vm1, %v4475_v18 }
 0x125   :  { %4254 = vmatmul.mubr.msk.f32.vlgmr.msra.gmra.mxu0 %vm274_vm2, %v4648_v35  ;;  %4261 = vmatprep.subr.mxu0 %v4475_v18 }
 0x126   :  { %4209 = vmatmul.mubr.msk.f32.vlgmr.msra.gmra.mxu1 %vm274_vm2, %v4648_v35  ;;  %4262 = vmatpush3.msra.mxu0 %v4582_v17 }
 0x127   :  { %4217 = vmatpush3.msra.mxu1 %v4544_v8  ;;  %4218 = vmatprep.mubr.msk.f32.mxu1 %vm4476_vm1, %v4475_v18 }
 0x128   :  { %4226 = vmatprep.subr.mxu1 %v4475_v18  ;;  %4263 = vmatprep.mubr.msk.f32.mxu0 %vm4476_vm1, %v4475_v18 }
 0x129   :  { %4264 = vmatmul.mubr.msk.f32.vlgmr.msra.gmra.mxu0 %vm274_vm2, %v4648_v35  ;;  %4294 = vmatprep.subr.mxu0 %v4475_v18 }
 0x12a   :  { %4219 = vmatmul.mubr.msk.f32.vlgmr.msra.gmra.mxu1 %vm274_vm2, %v4648_v35  ;;  %4296 = vmatprep.mubr.msk.f32.mxu0 %vm4476_vm1, %v4475_v18 }
 0x12b   :  { %4227 = vmatpush3.msra.mxu1 %v4552_v10  ;;  %4228 = vmatprep.mubr.msk.f32.mxu1 %vm4476_vm1, %v4475_v18 }
 0x12c   :  { %4236 = vmatprep.subr.mxu1 %v4475_v18 }
 0x12e   :  { %4229 = vmatmul.mubr.msk.f32.vlgmr.msra.gmra.mxu1 %vm274_vm2, %v4648_v35 }
 0x12f   :  { %4237 = vmatpush3.msra.mxu1 %v4560_v12  ;;  %4238 = vmatprep.mubr.msk.f32.mxu1 %vm4476_vm1, %v4475_v18 }
 0x130   :  { %4246 = vmatprep.subr.mxu1 %v4475_v18 }
 0x132   :  { %4239 = vmatmul.mubr.msk.f32.vlgmr.msra.gmra.mxu1 %vm274_vm2, %v4648_v35 }
 0x133   :  { %4247 = vmatpush3.msra.mxu1 %v4568_v14  ;;  %4248 = vmatprep.mubr.msk.f32.mxu1 %vm4476_vm1, %v4475_v18 }
 0x134   :  { %4256 = vmatprep.subr.mxu1 %v4475_v18 }
 0x136   :  { %4249 = vmatmul.mubr.msk.f32.vlgmr.msra.gmra.mxu1 %vm274_vm2, %v4648_v35 }
 0x137   :  { %4257 = vmatpush3.msra.mxu1 %v4576_v16  ;;  %4258 = vmatprep.mubr.msk.f32.mxu1 %vm4476_vm1, %v4475_v18 }
 0x138   :  { %4266 = vmatprep.subr.mxu1 %v2523_v37 }
 0x13a   :  { %4259 = vmatmul.mubr.msk.f32.vlgmr.msra.gmra.mxu1 %vm274_vm2, %v4648_v35 }
 0x13b   :  { %4267 = vmatpush3.msra.mxu1 %v2523_v37  ;;  %4270 = vmatprep.mubr.msk.f32.mxu1 %vm78_vm0, %v4522_v2 }
 0x13c   :  { %4268 = vmatprep.subr.mxu1 %v2522_v38 }
 0x13d   :  { %4269 = vmatpush3.msra.mxu1 %v2522_v38 }
 0x13e   :  { %4271 = vmatmul.mubr.msk.f32.vlgmr.msra.gmra.mxu1 %vm78_vm0, %v4526_v3  ;;  %4334 = vmatprep.subr.mxu1 %v4475_v18 }
 0x13f   :  { %4273 = vmatprep.mubr.msk.f32.mxu1 %vm78_vm0, %v4528_v4 }
 0x142   :  { %4274 = vmatmul.mubr.msk.f32.gmra.mxu1 %vm78_vm0, %v4534_v5 }
 0x143   :  { %4276 = vmatprep.mubr.msk.f32.mxu1 %vm78_vm0, %v4536_v6 }
 0x146   :  { %4277 = vmatmul.mubr.msk.f32.gmra.mxu1 %vm78_vm0, %v4542_v7 }
 0x147   :  { %4279 = vmatprep.mubr.msk.f32.mxu1 %vm78_vm0, %v4544_v8 }
 0x14a   :  { %4280 = vmatmul.mubr.msk.f32.gmra.mxu1 %vm78_vm0, %v4550_v9 }
 0x14b   :  { %4282 = vmatprep.mubr.msk.f32.mxu1 %vm78_vm0, %v4552_v10 }
 0x14e   :  { %4283 = vmatmul.mubr.msk.f32.gmra.mxu1 %vm78_vm0, %v4558_v11 }
 0x14f   :  { %4285 = vmatprep.mubr.msk.f32.mxu1 %vm78_vm0, %v4560_v12 }
 0x152   :  { %4286 = vmatmul.mubr.msk.f32.gmra.mxu1 %vm78_vm0, %v4566_v13 }
 0x153   :  { %4288 = vmatprep.mubr.msk.f32.mxu1 %vm78_vm0, %v4568_v14 }
 0x156   :  { %4289 = vmatmul.mubr.msk.f32.gmra.mxu1 %vm78_vm0, %v4574_v15 }
 0x157   :  { %4291 = vmatprep.mubr.msk.f32.mxu1 %vm78_vm0, %v4576_v16 }
 0x15a   :  { %4292 = vmatmul.mubr.msk.f32.gmra.mxu1 %vm78_vm0, %v4582_v17 }
 0x15b   :  { %4336 = vmatprep.mubr.msk.f32.mxu1 %vm4476_vm1, %v4475_v18 }
 0x1ae   :  { %v344_v39 = vpop.f32.mrf.mxu1 }
 0x1b0   :  { %v4110_v42 = vpop.f32.mrf.mxu1 }
 0x1b2   :  { %v414_v43 = vpop.f32.mrf.mxu1 }
 0x1b4   :  { %v4115_v44 = vpop.f32.mrf.mxu1 }
 0x1b6   :  { %v484_v45 = vpop.f32.mrf.mxu1 }
 0x1b8   :  { %v4120_v46 = vpop.f32.mrf.mxu1 }
 0x1ba   :  { %v554_v47 = vpop.f32.mrf.mxu1 }
 0x1bc   :  { %v4125_v48 = vpop.f32.mrf.mxu1  ;;  %v974_v49 = vpop.f32.mrf.mxu0 }
 0x1be   :  { %v624_v50 = vpop.f32.mrf.mxu1  ;;  %v4155_v51 = vpop.f32.mrf.mxu0 }
 0x1c0   :  { %v4130_v52 = vpop.f32.mrf.mxu1  ;;  %v1114_v53 = vpop.f32.mrf.mxu0 }
 0x1c2   :  { %v694_v54 = vpop.f32.mrf.mxu1  ;;  %v4165_v55 = vpop.f32.mrf.mxu0 }
 0x1c4   :  { %v4135_v56 = vpop.f32.mrf.mxu1  ;;  %v1254_v57 = vpop.f32.mrf.mxu0 }
 0x1c6   :  { %v764_v58 = vpop.f32.mrf.mxu1  ;;  %v4175_v59 = vpop.f32.mrf.mxu0 }
 0x1c7   :  { %v4839_v59 = vld [vmem:[#allocation7 + $0x10] sm:$0xff] }
 0x1c8   :  { %v4140_v60 = vpop.f32.mrf.mxu1  ;;  %v1394_v61 = vpop.f32.mrf.mxu0 }
 0x1ca   :  { %v834_v62 = vpop.f32.mrf.mxu1  ;;  %v4185_v63 = vpop.f32.mrf.mxu0 }
 0x1cc   :  { %v4145_v0 = vpop.f32.mrf.mxu1  ;;  %v1537_v1 = vpop.f32.mrf.mxu0 }
 0x1cd   :  { %v4807_v2 = vadd.f32 %v1537_v1, %v414_v43 }
 0x1ce   :  { %v904_v3 = vpop.f32.mrf.mxu1  ;;  %v4195_v4 = vpop.f32.mrf.mxu0 }
 0x1d0   :  { %v4150_v5 = vpop.f32.mrf.mxu1  ;;  %v1677_v6 = vpop.f32.mrf.mxu0 }
 0x1d1   :  { %v4809_v7 = vadd.f32 %v1677_v6, %v554_v47 }
 0x1d2   :  { %v1044_v8 = vpop.f32.mrf.mxu1  ;;  %v4205_v9 = vpop.f32.mrf.mxu0 }
 0x1d4   :  { %v4160_v10 = vpop.f32.mrf.mxu1  ;;  %v1817_v11 = vpop.f32.mrf.mxu0 }
 0x1d5   :  { %v4811_v12 = vadd.f32 %v1817_v11, %v694_v54 }
 0x1d6   :  { %v1184_v13 = vpop.f32.mrf.mxu1  ;;  %v4215_v14 = vpop.f32.mrf.mxu0 }
 0x1d8   :  { %v4170_v15 = vpop.f32.mrf.mxu1  ;;  %v1957_v16 = vpop.f32.mrf.mxu0 }
 0x1d9   :  { %v4813_v17 = vadd.f32 %v1957_v16, %v834_v62  ;;  %v4915_v15 = vpop.permute.xlu0 %3813 }
 0x1da   :  { %v1324_v19 = vpop.f32.mrf.mxu1  ;;  %v4225_v20 = vpop.f32.mrf.mxu0 }
 0x1dc   :  { %v4180_v21 = vpop.f32.mrf.mxu1 }
 0x1dd   :  { %v2097_v22 = vpop.f32.mrf.mxu0 }
 0x1de   :  { %v1467_v23 = vpop.f32.mrf.mxu1  ;;  %v4815_v24 = vadd.f32 %v2097_v22, %v974_v49 }
 0x1df   :  { %v4817_v25 = vadd.f32 %v1467_v23, %v344_v39  ;;  %v4235_v26 = vpop.f32.mrf.mxu0 }
 0x1e0   :  { %v4190_v27 = vpop.f32.mrf.mxu1 }
 0x1e1   :  { %v2237_v28 = vpop.f32.mrf.mxu0 }
 0x1e2   :  { %v1607_v29 = vpop.f32.mrf.mxu1  ;;  %v4819_v30 = vadd.f32 %v2237_v28, %v1114_v53 }
 0x1e3   :  { %v4821_v31 = vadd.f32 %v1607_v29, %v484_v45  ;;  %v4245_v32 = vpop.f32.mrf.mxu0 }
 0x1e4   :  { %v4200_v33 = vpop.f32.mrf.mxu1 }
 0x1e5   :  { %v2377_v34 = vpop.f32.mrf.mxu0 }
 0x1e6   :  { %v1747_v35 = vpop.f32.mrf.mxu1  ;;  %v4823_v36 = vadd.f32 %v2377_v34, %v1254_v57 }
 0x1e7   :  { %v4825_v37 = vadd.f32 %v1747_v35, %v624_v50  ;;  %v4255_v38 = vpop.f32.mrf.mxu0 }
 0x1e8   :  { %v4210_v40 = vpop.f32.mrf.mxu1 }
 0x1e9   :  { %v2517_v39 = vpop.f32.mrf.mxu0 }
 0x1ea   :  { %v1887_v41 = vpop.f32.mrf.mxu1  ;;  %v4827_v42 = vadd.f32 %v2517_v39, %v1394_v61 }
 0x1eb   :  { %v4829_v43 = vadd.f32 %v1887_v41, %v764_v58  ;;  %v4265_v44 = vpop.f32.mrf.mxu0 }
 0x1ec   :  { %v4220_v46 = vpop.f32.mrf.mxu1 }
 0x1ee   :  { %v2027_v45 = vpop.f32.mrf.mxu1 }
 0x1ef   :  { %v4831_v47 = vadd.f32 %v2027_v45, %v904_v3 }
 0x1f0   :  { %v4230_v48 = vpop.f32.mrf.mxu1 }
 0x1f2   :  { %v2167_v49 = vpop.f32.mrf.mxu1 }
 0x1f3   :  { %v4833_v51 = vadd.f32 %v2167_v49, %v1044_v8 }
 0x1f4   :  { %v4240_v52 = vpop.f32.mrf.mxu1 }
 0x1f6   :  { %v2307_v50 = vpop.f32.mrf.mxu1 }
 0x1f7   :  { %v4835_v53 = vadd.f32 %v2307_v50, %v1184_v13 }
 0x1f8   :  { %v4250_v54 = vpop.f32.mrf.mxu1 }
 0x1fa   :  { %v2447_v55 = vpop.f32.mrf.mxu1 }
 0x1fb   :  { %v4837_v56 = vadd.f32 %v2447_v55, %v1324_v19 }
 0x1fc   :  { %v4260_v57 = vpop.f32.mrf.mxu1 }
 0x1fe   :  { %v4272_v58 = vpop.f32.mrf.mxu1 }
 0x200   :  { %v2590_v60 = vpop.f32.mrf.mxu1 }
 0x201   :  { %4295 = vmatpush3.msra.mxu0 %v2590_v60 }
 0x202   :  { %v4275_v61 = vpop.f32.mrf.mxu1  ;;  %4297 = vmatmul.mubr.msk.f32.vlgmr.msra.gmra.mxu0 %vm274_vm2, %v4839_v59  ;;  %4299 = vmatprep.subr.mxu0 %v4475_v18 }
 0x203   :  { %4300 = vmatpush3.msra.mxu0 %v4272_v58  ;;  %4301 = vmatprep.mubr.msk.f32.mxu0 %vm4476_vm1, %v4475_v18 }
 0x204   :  { %v2600_v62 = vpop.f32.mrf.mxu1  ;;  %4304 = vmatprep.subr.mxu0 %v4475_v18 }
 0x206   :  { %v4278_v63 = vpop.f32.mrf.mxu1  ;;  %4302 = vmatmul.mubr.msk.f32.vlgmr.msra.gmra.mxu0 %vm274_vm2, %v4839_v59 }
 0x207   :  { %4305 = vmatpush3.msra.mxu0 %v2600_v62  ;;  %4306 = vmatprep.mubr.msk.f32.mxu0 %vm4476_vm1, %v4475_v18 }
 0x208   :  { %v2610_v0 = vpop.f32.mrf.mxu1  ;;  %4309 = vmatprep.subr.mxu0 %v4475_v18 }
 0x20a   :  { %v4281_v1 = vpop.f32.mrf.mxu1  ;;  %4307 = vmatmul.mubr.msk.f32.vlgmr.msra.gmra.mxu0 %vm274_vm2, %v4839_v59 }
 0x20b   :  { %4310 = vmatpush3.msra.mxu0 %v4275_v61  ;;  %4311 = vmatprep.mubr.msk.f32.mxu0 %vm4476_vm1, %v4475_v18 }
 0x20c   :  { %v2620_v3 = vpop.f32.mrf.mxu1  ;;  %4314 = vmatprep.subr.mxu0 %v4475_v18 }
 0x20e   :  { %v4284_v4 = vpop.f32.mrf.mxu1  ;;  %4312 = vmatmul.mubr.msk.f32.vlgmr.msra.gmra.mxu0 %vm274_vm2, %v4839_v59 }
 0x20f   :  { %4315 = vmatpush3.msra.mxu0 %v2610_v0  ;;  %4316 = vmatprep.mubr.msk.f32.mxu0 %vm4476_vm1, %v4475_v18 }
 0x210   :  { %v2630_v5 = vpop.f32.mrf.mxu1  ;;  %4319 = vmatprep.subr.mxu0 %v4475_v18 }
 0x211   :  { %4335 = vmatpush3.msra.mxu1 %v2630_v5 }
 0x212   :  { %v4287_v6 = vpop.f32.mrf.mxu1  ;;  %4317 = vmatmul.mubr.msk.f32.vlgmr.msra.gmra.mxu0 %vm274_vm2, %v4839_v59  ;;  %4337 = vmatmul.mubr.msk.f32.vlgmr.msra.gmra.mxu1 %vm274_vm2, %v4839_v59 }
 0x213   :  { %4320 = vmatpush3.msra.mxu0 %v4278_v63  ;;  %4344 = vmatprep.subr.mxu1 %v4475_v18 }
 0x214   :  { %v2640_v8 = vpop.f32.mrf.mxu1  ;;  %4321 = vmatprep.mubr.msk.f32.mxu0 %vm4476_vm1, %v4475_v18  ;;  %4324 = vmatprep.subr.mxu0 %v4475_v18 }
 0x215   :  { %4345 = vmatpush3.msra.mxu1 %v2640_v8  ;;  %4346 = vmatprep.mubr.msk.f32.mxu1 %vm4476_vm1, %v4475_v18 }
 0x216   :  { %v4290_v9 = vpop.f32.mrf.mxu1  ;;  %4322 = vmatmul.mubr.msk.f32.vlgmr.msra.gmra.mxu0 %vm274_vm2, %v4839_v59  ;;  %4347 = vmatmul.mubr.msk.f32.vlgmr.msra.gmra.mxu1 %vm274_vm2, %v4839_v59 }
 0x217   :  { %4325 = vmatpush3.msra.mxu0 %v2620_v3  ;;  %4354 = vmatprep.subr.mxu1 %v4475_v18 }
 0x218   :  { %v2650_v10 = vpop.f32.mrf.mxu1  ;;  %4326 = vmatprep.mubr.msk.f32.mxu0 %vm4476_vm1, %v4475_v18  ;;  %4329 = vmatprep.subr.mxu0 %v4475_v18 }
 0x219   :  { %4355 = vmatpush3.msra.mxu1 %v2650_v10  ;;  %4356 = vmatprep.mubr.msk.f32.mxu1 %vm4476_vm1, %v4475_v18 }
 0x21a   :  { %v4293_v11 = vpop.f32.mrf.mxu1  ;;  %4327 = vmatmul.mubr.msk.f32.vlgmr.msra.gmra.mxu0 %vm274_vm2, %v4839_v59  ;;  %4357 = vmatmul.mubr.msk.f32.vlgmr.msra.gmra.mxu1 %vm274_vm2, %v4839_v59 }
 0x21b   :  { %4330 = vmatpush3.msra.mxu0 %v4281_v1  ;;  %4364 = vmatprep.subr.mxu1 %v4475_v18 }
 0x21c   :  { %v2660_v13 = vpop.f32.mrf.mxu1  ;;  %4331 = vmatprep.mubr.msk.f32.mxu0 %vm4476_vm1, %v4475_v18  ;;  %4339 = vmatprep.subr.mxu0 %v4475_v18 }
 0x21d   :  { %4365 = vmatpush3.msra.mxu1 %v2660_v13  ;;  %4366 = vmatprep.mubr.msk.f32.mxu1 %vm4476_vm1, %v4475_v18 }
 0x21e   :  { %4332 = vmatmul.mubr.msk.f32.vlgmr.msra.gmra.mxu0 %vm274_vm2, %v4839_v59  ;;  %4367 = vmatmul.mubr.msk.f32.vlgmr.msra.gmra.mxu1 %vm274_vm2, %v4839_v59 }
 0x21f   :  { %4340 = vmatpush3.msra.mxu0 %v4284_v4  ;;  %4341 = vmatprep.mubr.msk.f32.mxu0 %vm4476_vm1, %v4475_v18 }
 0x220   :  { %4349 = vmatprep.subr.mxu0 %v4475_v18 }
 0x222   :  { %4342 = vmatmul.mubr.msk.f32.vlgmr.msra.gmra.mxu0 %vm274_vm2, %v4839_v59 }
 0x223   :  { %4350 = vmatpush3.msra.mxu0 %v4287_v6  ;;  %4351 = vmatprep.mubr.msk.f32.mxu0 %vm4476_vm1, %v4475_v18 }
 0x224   :  { %4359 = vmatprep.subr.mxu0 %v4475_v18 }
 0x226   :  { %4352 = vmatmul.mubr.msk.f32.vlgmr.msra.gmra.mxu0 %vm274_vm2, %v4839_v59 }
 0x227   :  { %4360 = vmatpush3.msra.mxu0 %v4290_v9  ;;  %4361 = vmatprep.mubr.msk.f32.mxu0 %vm4476_vm1, %v4475_v18 }
 0x228   :  { %4369 = vmatprep.subr.mxu0 %v4475_v18 }
 0x22a   :  { %4362 = vmatmul.mubr.msk.f32.vlgmr.msra.gmra.mxu0 %vm274_vm2, %v4839_v59 }
 0x22b   :  { %4370 = vmatpush3.msra.mxu0 %v4293_v11  ;;  %4371 = vmatprep.mubr.msk.f32.mxu0 %vm4476_vm1, %v4475_v18 }
 0x22e   :  { %4372 = vmatmul.mubr.msk.f32.vlgmr.msra.gmra.mxu0 %vm274_vm2, %v4839_v59 }
 0x2c2   :  { %v2740_v14 = vpop.f32.mrf.mxu0 }
 0x2c3   :  { %v3794_v16 = vadd.f32 %v2740_v14, %v4817_v25 }
 0x2c4   :  { %v4298_v19 = vpop.f32.mrf.mxu0 }
 0x2c5   :  { %v3816_v20 = vadd.f32 %v4915_v15, %v3794_v16 }
 0x2c6   :  { %v2810_v21 = vpop.f32.mrf.mxu0 }
 0x2c7   :  { %3832 = vst.msk [vmem:[#allocation8] sm:$0xff] %vm78_vm0, %v3816_v20  ;;  %v3795_v22 = vadd.f32 %v2810_v21, %v4807_v2 }
 0x2c8   :  { %v4303_v23 = vpop.f32.mrf.mxu0 }
 0x2c9   :  { %v3817_v26 = vadd.f32 %v4915_v15, %v3795_v22 }
 0x2ca   :  { %v2880_v18 = vpop.f32.mrf.mxu0 }
 0x2cb   :  { %3833 = vst.msk [vmem:[#allocation8 + $0x8] sm:$0xff] %vm78_vm0, %v3817_v26  ;;  %v3796_v27 = vadd.f32 %v2880_v18, %v4821_v31 }
 0x2cc   :  { %v4308_v28 = vpop.f32.mrf.mxu0 }
 0x2cd   :  { %v3818_v29 = vadd.f32 %v4915_v15, %v3796_v27 }
 0x2ce   :  { %v2950_v25 = vpop.f32.mrf.mxu0 }
 0x2cf   :  { %3834 = vst.msk [vmem:[#allocation8 + $0x10] sm:$0xff] %vm78_vm0, %v3818_v29  ;;  %v3797_v32 = vadd.f32 %v2950_v25, %v4809_v7 }
 0x2d0   :  { %v4313_v33 = vpop.f32.mrf.mxu0 }
 0x2d1   :  { %v3819_v34 = vadd.f32 %v4915_v15, %v3797_v32 }
 0x2d2   :  { %v3020_v2 = vpop.f32.mrf.mxu0  ;;  %v3300_v35 = vpop.f32.mrf.mxu1 }
 0x2d3   :  { %3835 = vst.msk [vmem:[#allocation8 + $0x18] sm:$0xff] %vm78_vm0, %v3819_v34  ;;  %v3798_v38 = vadd.f32 %v3020_v2, %v4825_v37  ;;  %v3802_v40 = vadd.f32 %v3300_v35, %v4831_v47 }
 0x2d4   :  { %v4318_v31 = vpop.f32.mrf.mxu0  ;;  %v4338_v39 = vpop.f32.mrf.mxu1 }
 0x2d5   :  { %v3820_v41 = vadd.f32 %v4915_v15, %v3798_v38  ;;  %v3824_v44 = vadd.f32 %v4915_v15, %v3802_v40 }
 0x2d6   :  { %v3090_v46 = vpop.f32.mrf.mxu0  ;;  %v3440_v45 = vpop.f32.mrf.mxu1 }
 0x2d7   :  { %3836 = vst.msk [vmem:[#allocation8 + $0x20] sm:$0xff] %vm78_vm0, %v3820_v41  ;;  %3840 = vst.msk [vmem:[#allocation8 + $0x40] sm:$0xff] %vm78_vm0, %v3824_v44  ;;  %v3799_v7 = vadd.f32 %v3090_v46, %v4811_v12  ;;  %v3804_v48 = vadd.f32 %v3440_v45, %v4833_v51 }
 0x2d8   :  { %v4323_v49 = vpop.f32.mrf.mxu0  ;;  %v4348_v37 = vpop.f32.mrf.mxu1 }
 0x2d9   :  { %v3821_v47 = vadd.f32 %v4915_v15, %v3799_v7  ;;  %v3826_v52 = vadd.f32 %v4915_v15, %v3804_v48 }
 0x2da   :  { %v3160_v50 = vpop.f32.mrf.mxu0  ;;  %v3580_v54 = vpop.f32.mrf.mxu1 }
 0x2db   :  { %3837 = vst.msk [vmem:[#allocation8 + $0x28] sm:$0xff] %vm78_vm0, %v3821_v47  ;;  %3842 = vst.msk [vmem:[#allocation8 + $0x50] sm:$0xff] %vm78_vm0, %v3826_v52  ;;  %v3800_v55 = vadd.f32 %v3160_v50, %v4829_v43  ;;  %v3806_v57 = vadd.f32 %v3580_v54, %v4835_v53 }
 0x2dc   :  { %v4328_v58 = vpop.f32.mrf.mxu0  ;;  %v4358_v12 = vpop.f32.mrf.mxu1 }
 0x2dd   :  { %v3822_v51 = vadd.f32 %v4915_v15, %v3800_v55  ;;  %v3828_v59 = vadd.f32 %v4915_v15, %v3806_v57 }
 0x2de   :  { %v3230_v60 = vpop.f32.mrf.mxu0  ;;  %v3720_v61 = vpop.f32.mrf.mxu1 }
 0x2df   :  { %3838 = vst.msk [vmem:[#allocation8 + $0x30] sm:$0xff] %vm78_vm0, %v3822_v51  ;;  %3844 = vst.msk [vmem:[#allocation8 + $0x60] sm:$0xff] %vm78_vm0, %v3828_v59  ;;  %v3801_v62 = vadd.f32 %v3230_v60, %v4813_v17  ;;  %v3808_v63 = vadd.f32 %v3720_v61, %v4837_v56 }
 0x2e0   :  { %v4333_v0 = vpop.f32.mrf.mxu0  ;;  %v4368_v43 = vpop.f32.mrf.mxu1 }
 0x2e1   :  { %v3823_v53 = vadd.f32 %v4915_v15, %v3801_v62  ;;  %v3830_v1 = vadd.f32 %v4915_v15, %v3808_v63 }
 0x2e2   :  { %v3370_v3 = vpop.f32.mrf.mxu0 }
 0x2e3   :  { %3839 = vst.msk [vmem:[#allocation8 + $0x38] sm:$0xff] %vm78_vm0, %v3823_v53  ;;  %3846 = vst.msk [vmem:[#allocation8 + $0x70] sm:$0xff] %vm78_vm0, %v3830_v1  ;;  %v3803_v4 = vadd.f32 %v3370_v3, %v4815_v24 }
 0x2e4   :  { %v4343_v5 = vpop.f32.mrf.mxu0 }
 0x2e5   :  { %v3825_v6 = vadd.f32 %v4915_v15, %v3803_v4 }
 0x2e6   :  { %v3510_v8 = vpop.f32.mrf.mxu0 }
 0x2e7   :  { %3841 = vst.msk [vmem:[#allocation8 + $0x48] sm:$0xff] %vm78_vm0, %v3825_v6  ;;  %v3805_v17 = vadd.f32 %v3510_v8, %v4819_v30 }
 0x2e8   :  { %v4353_v56 = vpop.f32.mrf.mxu0 }
 0x2e9   :  { %v3827_v9 = vadd.f32 %v4915_v15, %v3805_v17 }
 0x2ea   :  { %v3650_v10 = vpop.f32.mrf.mxu0 }
 0x2eb   :  { %3843 = vst.msk [vmem:[#allocation8 + $0x58] sm:$0xff] %vm78_vm0, %v3827_v9  ;;  %v3807_v11 = vadd.f32 %v3650_v10, %v4823_v36 }
 0x2ec   :  { %v4363_v13 = vpop.f32.mrf.mxu0 }
 0x2ed   :  { %v3829_v14 = vadd.f32 %v4915_v15, %v3807_v11 }
 0x2ee   :  { %v3790_v24 = vpop.f32.mrf.mxu0 }
 0x2ef   :  { %3845 = vst.msk [vmem:[#allocation8 + $0x68] sm:$0xff] %vm78_vm0, %v3829_v14  ;;  %v3809_v16 = vadd.f32 %v3790_v24, %v4827_v42 }
 0x2f0   :  { %v4373_v19 = vpop.f32.mrf.mxu0 }
 0x2f1   :  { %v3831_v30 = vadd.f32 %v4915_v15, %v3809_v16 }
 0x2f3   :  { %3847 = vst.msk [vmem:[#allocation8 + $0x78] sm:$0xff] %vm78_vm0, %v3831_v30 }
 0x2f4   :  { %4455 = shalt.err (!%p4452_p5)
}
 0x2f5   :  { %3859 = dma.vmem_to_hbm [thread:$0]  %s3854_s5, 2048, %s4975_s4, [#allocation4], %s4472_s20, %s4472_s20, %s4473_s21  }
 0x2f6   :  { %4468 = dma.done.wait [#allocation4], 2048  }
 0x2f7   :  { %4469 = vsyncadd [#allocation4], 4294965248 }
 0x2f8   :  { %3863 = vsyncpa [#allocation3], 1 }
 0x2f9   :  { %3864 = vsyncpa [#allocation6], 1 }
 0x2fa   :  { %3865 = vsyncpa [#allocation4], 1 }

</bundles_post_ra>
